<compile_context>
chip_gen: v6e
topology: v6e:2x2x1
jax: 0.10.0
libtpu: 0.0.40
codegen_flags: <defaults>
</compile_context>

<pallas_src>
import functools

import jax
import jax.numpy as jnp
from jax import lax
from jax.experimental import pallas as pl
from jax.experimental.pallas import tpu as pltpu


# ----------------------------------------------------------------------------- #
# Helpers
# ----------------------------------------------------------------------------- #
def _cdiv(a, b):
    return (a + b - 1) // b


def _round_up(x, m):
    return _cdiv(x, m) * m


def _vmem_capacity_bytes():
    """Per-TensorCore VMEM capacity; conservative fallback if query fails."""
    try:
        info = pltpu.get_tpu_info()
        cap = getattr(info, "vmem_capacity_bytes", None)
        if cap:
            return int(cap)
    except Exception:
        pass
    return 64 * 1024 * 1024  # v7x-sized fallback (most restrictive generation)


def _load_wb(wb_ref, c, ct):
    """Slice the resident (Cp, 2) weight/bias block for this channel tile."""
    if wb_ref.shape[0] == ct:          # single channel block -> static full read
        wb = wb_ref[...]
    else:                               # Cp is a multiple of ct; slice stays in-bounds
        c0 = pl.multiple_of(c * ct, ct)
        wb = wb_ref[pl.ds(c0, ct), :]
    w = wb[:, 0:1][None, :, :]          # (1, ct, 1) f32
    b = wb[:, 1:2][None, :, :]          # (1, ct, 1) f32
    return w, b


def _affine_store(o_ref, x_ref, scale_f32, bias_f32):
    """out = x * (w*inv) + b.  bf16 inputs: do the affine in bf16 (no resident f32 copy)."""
    if o_ref.dtype == jnp.bfloat16:
        o_ref[...] = (x_ref[...] * scale_f32.astype(jnp.bfloat16)
                      + bias_f32.astype(jnp.bfloat16))
    else:
        o_ref[...] = (x_ref[...].astype(jnp.float32) * scale_f32
                      + bias_f32).astype(o_ref.dtype)


# ----------------------------------------------------------------------------- #
# Kernels
# ----------------------------------------------------------------------------- #
def _rmsnorm2d_kernel(x_ref, wb_ref, o_ref, *, eps, inv_hw, ct):
    """Single-pass: the full spatial extent (HW) is resident in the block."""
    c = pl.program_id(1)
    xf = x_ref[...].astype(jnp.float32)              # (nb, ct, HW); f32 only for the reduce
    ss = jnp.sum(xf * xf, axis=-1, keepdims=True)    # (nb, ct, 1)
    inv = lax.rsqrt(ss * inv_hw + eps)               # EUP rsqrt (free slot)
    w, b = _load_wb(wb_ref, c, ct)
    _affine_store(o_ref, x_ref, w * inv, b)          # weight folded on the tiny tensor


def _rmsnorm2d_split_kernel(x_ref, wb_ref, o_ref, ss_ref, *, eps, inv_hw, ct,
                            n_hw, hw_tile, hw_total, needs_mask):
    """Two-pass over HW chunks: phase 0 accumulates sum-of-squares, phase 1 applies."""
    c = pl.program_id(1)
    k = pl.program_id(2)

    @pl.when(k == 0)
    def _reset():
        ss_ref[...] = jnp.zeros_like(ss_ref)

    @pl.when(k < n_hw)
    def _accumulate():
        xf = x_ref[...].astype(jnp.float32)          # (nb, ct, hw_tile)
        sq = xf * xf
        if needs_mask:
            # Last chunk reads past HW -> zero the garbage lanes before reducing.
            lane = lax.broadcasted_iota(jnp.int32, sq.shape, sq.ndim - 1)
            sq = jnp.where(lane + k * hw_tile < hw_total, sq, 0.0)
        ss_ref[...] += jnp.sum(sq, axis=-1, keepdims=True)

    @pl.when(k >= n_hw)
    def _apply():
        inv = lax.rsqrt(ss_ref[...] * inv_hw + eps)
        w, b = _load_wb(wb_ref, c, ct)
        _affine_store(o_ref, x_ref, w * inv, b)


# ----------------------------------------------------------------------------- #
# Wrapper
# ----------------------------------------------------------------------------- #
def rmsnorm2d(x, weight, bias, eps=1e-6, *, target_block_bytes=None):
    """x: (N, C, H, W); weight/bias: (C,) or (1, C, 1, 1). Returns same shape/dtype."""
    N, C, H, W = x.shape
    HW = H * W
    dtype = x.dtype
    itemsize = jnp.dtype(dtype).itemsize
    sublane = 16 if dtype == jnp.bfloat16 else 8
    lane = 128

    phys = _vmem_capacity_bytes()
    # Scoped-VMEM cap with headroom (e.g. ~48 MiB on v7x's 64 MiB, ~96 MiB on 128 MiB parts).
    budget = min(int(phys * 0.75), 96 << 20)
    if target_block_bytes is None:
        target_block_bytes = (4 << 20) if phys >= (100 << 20) else (2 << 20)
    target = int(target_block_bytes)

    row_bytes = HW * itemsize
    min_ct = C if C <= sublane else sublane

    def _needed(nb_, ct_, hw_):
        # 2x double-buffered (in + out) blocks + ~2 f32-block intermediates + slack.
        blk = nb_ * ct_ * hw_ * itemsize
        f32_blk = nb_ * ct_ * hw_ * 4
        return 4 * blk + 2 * f32_blk + (1 << 20)

    # ---- Plan tiling --------------------------------------------------------
    mode = "split" if min_ct * row_bytes > 2 * target else "single"
    nb, ct, hw_tile, n_hw = 1, min_ct, HW, 1

    if mode == "single":
        if C * row_bytes <= target:
            ct = C                                        # full channel dim (any C)
            nb = max(1, min(N, target // max(1, C * row_bytes)))
        else:
            ct = max(sublane, (target // row_bytes) // sublane * sublane)
            ct = min(ct, _round_up(C, sublane))
            nb = 1
        # Shrink until the pipeline fits the scoped-VMEM budget.
        while _needed(nb, ct, HW) > budget and nb > 1:
            nb = (nb + 1) // 2
        while _needed(nb, ct, HW) > budget and C > sublane and ct > sublane:
            ct = max(sublane, _round_up(ct // 2, sublane))
        if _needed(nb, ct, HW) > budget:
            mode = "split"
        else:
            # >= 2 steps on a "parallel" axis so both v7x TensorCores get work.
            if _cdiv(N, nb) * _cdiv(C, ct) < 2:
                if C > sublane:
                    ct = max(sublane, _round_up((C + 1) // 2, sublane))
                elif N > 1:
                    nb = (N + 1) // 2

    if mode == "split":
        nb, ct = 1, min_ct
        hw_tile = max(lane, (target // max(1, ct * itemsize)) // lane * lane)
        hw_tile = min(hw_tile, _round_up(HW, lane))
        while _needed(1, ct, hw_tile) > budget and hw_tile > lane:
            hw_tile = max(lane, (hw_tile // 2) // lane * lane)
        n_hw = _cdiv(HW, hw_tile)

    n_b_blocks = _cdiv(N, nb)
    n_c_blocks = _cdiv(C, ct)
    Cp = n_c_blocks * ct

    # Weight & bias packed into one tiny resident f32 (Cp, 2) block.  Padding this
    # (tiny) array is cheap; x itself is never padded.
    wb = jnp.stack(
        [jnp.asarray(weight).reshape(-1).astype(jnp.float32),
         jnp.asarray(bias).reshape(-1).astype(jnp.float32)], axis=-1)
    if Cp != C:
        wb = jnp.pad(wb, ((0, Cp - C), (0, 0)))

    x3 = x.reshape(N, C, HW)          # contiguous reshape: free
    inv_hw = 1.0 / float(HW)
    elems = N * C * HW

    vmem_limit = int(min(budget,
                         max(32 << 20, _needed(nb, ct, HW if mode == "single" else hw_tile))))

    if mode == "single":
        kernel = functools.partial(_rmsnorm2d_kernel, eps=float(eps), inv_hw=inv_hw, ct=ct)
        cost = pl.CostEstimate(flops=5 * elems, transcendentals=N * C,
                               bytes_accessed=2 * elems * itemsize + Cp * 8)
        out = pl.pallas_call(
            kernel,
            out_shape=jax.ShapeDtypeStruct((N, C, HW), dtype),
            grid_spec=pltpu.PrefetchScalarGridSpec(
                num_scalar_prefetch=0,
                grid=(n_b_blocks, n_c_blocks),
                in_specs=[
                    pl.BlockSpec((nb, ct, HW), lambda i, c: (i, c, 0)),
                    pl.BlockSpec((Cp, 2), lambda i, c: (0, 0)),      # resident w/b
                ],
                out_specs=pl.BlockSpec((nb, ct, HW), lambda i, c: (i, c, 0)),
            ),
            compiler_params=pltpu.CompilerParams(
                dimension_semantics=("parallel", "parallel"),
                vmem_limit_bytes=vmem_limit,
            ),
            cost_estimate=cost,
        )(x3, wb)
    else:
        needs_mask = (HW % hw_tile) != 0
        kernel = functools.partial(
            _rmsnorm2d_split_kernel, eps=float(eps), inv_hw=inv_hw, ct=ct,
            n_hw=n_hw, hw_tile=hw_tile, hw_total=HW, needs_mask=needs_mask)
        cost = pl.CostEstimate(flops=5 * elems, transcendentals=N * C,
                               bytes_accessed=3 * elems * itemsize + Cp * 8)
        out = pl.pallas_call(
            kernel,
            out_shape=jax.ShapeDtypeStruct((N, C, HW), dtype),
            grid_spec=pltpu.PrefetchScalarGridSpec(
                num_scalar_prefetch=0,
                grid=(n_b_blocks, n_c_blocks, 2 * n_hw),
                in_specs=[
                    pl.BlockSpec((nb, ct, hw_tile),
                                 lambda i, c, k: (i, c, jnp.where(k < n_hw, k, k - n_hw))),
                    pl.BlockSpec((Cp, 2), lambda i, c, k: (0, 0)),    # resident w/b
                ],
                # Clamp to chunk 0 during the accumulate phase: the buffer is only
                # written back after it is fully overwritten in the apply phase.
                out_specs=pl.BlockSpec((nb, ct, hw_tile),
                                       lambda i, c, k: (i, c, jnp.maximum(k - n_hw, 0))),
                scratch_shapes=[pltpu.VMEM((nb, ct, 1), jnp.float32)],
            ),
            compiler_params=pltpu.CompilerParams(
                dimension_semantics=("parallel", "parallel", "arbitrary"),
                vmem_limit_bytes=vmem_limit,
            ),
            cost_estimate=cost,
        )(x3, wb)

    return out.reshape(N, C, H, W)


def rmsnorm2d_ref(x, weight, bias, eps=1e-6):
    """Pure-JAX reference mirroring the PyTorch forward."""
    xf = x.astype(jnp.float32)
    rms = jnp.sqrt(jnp.mean(xf * xf, axis=(2, 3), keepdims=True) + eps)
    xn = xf / rms
    w = jnp.asarray(weight).reshape(1, -1, 1, 1).astype(jnp.float32)
    b = jnp.asarray(bias).reshape(1, -1, 1, 1).astype(jnp.float32)
    return (w * xn + b).astype(x.dtype)


if __name__ == "__main__":
    key = jax.random.PRNGKey(0)

    # Main check: matches the PyTorch module defaults (ones/zeros parameters).
    N, C, H, W = 2, 4, 16, 16
    x = jax.random.normal(key, (N, C, H, W), dtype=jnp.float32)
    weight = jnp.ones((1, C, 1, 1), dtype=jnp.float32)
    bias = jnp.zeros((1, C, 1, 1), dtype=jnp.float32)
    out = jax.block_until_ready(rmsnorm2d(x, weight, bias, eps=1e-6))
    ref = rmsnorm2d_ref(x, weight, bias, eps=1e-6)
    assert out.shape == (N, C, H, W) and out.dtype == x.dtype
    assert jnp.allclose(out, ref, atol=1e-5, rtol=1e-5)

    k1, k2, k3, k4 = jax.random.split(key, 4)

    # Non-multiple-of-8 channels + random affine params (exercises channel-tail blocks).
    x2 = jax.random.normal(k1, (2, 10, 16, 16), jnp.float32)
    w2 = jax.random.normal(k2, (1, 10, 1, 1), jnp.float32)
    b2 = jax.random.normal(k3, (1, 10, 1, 1), jnp.float32)
    o2 = jax.block_until_ready(rmsnorm2d(x2, w2, b2))
    assert jnp.allclose(o2, rmsnorm2d_ref(x2, w2, b2), atol=1e-5, rtol=1e-5)

    # Force the two-pass HW-split path (ragged HW -> exercises lane-tail masking).
    x3 = jax.random.normal(k4, (1, 10, 20, 23), jnp.float32)
    o3 = jax.block_until_ready(rmsnorm2d(x3, w2, b2, target_block_bytes=4096))
    assert jnp.allclose(o3, rmsnorm2d_ref(x3, w2, b2), atol=1e-5, rtol=1e-5)

    # HW < 128 and C not a sublane multiple (full-dim blocks, masked stores).
    x4 = jax.random.normal(k2, (2, 3, 10, 9), jnp.float32)
    w4 = jax.random.normal(k3, (1, 3, 1, 1), jnp.float32)
    b4 = jax.random.normal(k4, (1, 3, 1, 1), jnp.float32)
    o4 = jax.block_until_ready(rmsnorm2d(x4, w4, b4))
    assert jnp.allclose(o4, rmsnorm2d_ref(x4, w4, b4), atol=1e-5, rtol=1e-5)

    # bf16 path (bf16 affine, f32 reduction).
    xb = jax.random.normal(k1, (2, 4, 16, 16), jnp.bfloat16)
    ob = jax.block_until_ready(rmsnorm2d(xb, weight, bias))
    refb = rmsnorm2d_ref(xb, weight, bias)
    assert ob.dtype == jnp.bfloat16
    assert jnp.allclose(ob.astype(jnp.float32), refb.astype(jnp.float32),
                        atol=1e-1, rtol=5e-2)

    print("KERNEL_OK")
</pallas_src>

<mosaic_0001>
module attributes {stable_mosaic.version = 11 : i64} {
  func.func @_rmsnorm2d_kernel(%arg0: i32, %arg1: i32, %arg2: memref<1x4x256xf32, #tpu.memory_space<vmem>>, %arg3: memref<4x2xf32, #tpu.memory_space<vmem>>, %arg4: memref<1x4x256xf32, #tpu.memory_space<vmem>>) attributes {dimension_semantics = [#tpu.dimension_semantics<parallel>, #tpu.dimension_semantics<parallel>], iteration_bounds = array<i64: 2, 1>, scalar_prefetch = 0 : i64, scratch_operands = 0 : i64, tpu.core_type = #tpu.core_type<tc>, window_params = [{transform_indices = @transform_0, window_bounds = array<i64: 1, 4, 256>}, {pipeline_mode = #tpu.pipeline_mode<synchronous>, transform_indices = @transform_1, window_bounds = array<i64: 4, 2>}, {transform_indices = @transform_2, window_bounds = array<i64: 1, 4, 256>}]} {
    %c0 = arith.constant 0 : index
    %c0_0 = arith.constant 0 : index
    %c0_1 = arith.constant 0 : index
    %0 = vector.load %arg2[%c0, %c0_0, %c0_1] : memref<1x4x256xf32, #tpu.memory_space<vmem>>, vector<1x4x256xf32>
    %1 = arith.mulf %0, %0 : vector<1x4x256xf32>
    %cst = arith.constant dense<0.000000e+00> : vector<1x4xf32>
    %2 = vector.multi_reduction <add>, %1, %cst [2] : vector<1x4x256xf32> to vector<1x4xf32>
    %3 = vector.shape_cast %2 : vector<1x4xf32> to vector<1x4x1xf32>
    %cst_2 = arith.constant 3.906250e-03 : f32
    %4 = vector.broadcast %cst_2 : f32 to vector<1x4x1xf32>
    %5 = arith.mulf %3, %4 : vector<1x4x1xf32>
    %cst_3 = arith.constant 9.99999997E-7 : f32
    %6 = vector.broadcast %cst_3 : f32 to vector<1x4x1xf32>
    %7 = arith.addf %5, %6 : vector<1x4x1xf32>
    %8 = math.rsqrt %7 : vector<1x4x1xf32>
    %c0_4 = arith.constant 0 : index
    %c0_5 = arith.constant 0 : index
    %9 = vector.load %arg3[%c0_4, %c0_5] : memref<4x2xf32, #tpu.memory_space<vmem>>, vector<4x2xf32>
    %10 = vector.extract_strided_slice %9 {offsets = [0, 0], sizes = [4, 1], strides = [1, 1]} : vector<4x2xf32> to vector<4x1xf32>
    %11 = vector.shape_cast %10 : vector<4x1xf32> to vector<1x4x1xf32>
    %12 = vector.extract_strided_slice %9 {offsets = [0, 1], sizes = [4, 1], strides = [1, 1]} : vector<4x2xf32> to vector<4x1xf32>
    %13 = vector.shape_cast %12 : vector<4x1xf32> to vector<1x4x1xf32>
    %14 = arith.mulf %11, %8 : vector<1x4x1xf32>
    %c0_6 = arith.constant 0 : index
    %c0_7 = arith.constant 0 : index
    %c0_8 = arith.constant 0 : index
    %15 = vector.load %arg2[%c0_6, %c0_7, %c0_8] : memref<1x4x256xf32, #tpu.memory_space<vmem>>, vector<1x4x256xf32>
    %16 = vector.broadcast %14 : vector<1x4x1xf32> to vector<1x4x256xf32>
    %17 = arith.mulf %15, %16 : vector<1x4x256xf32>
    %18 = vector.broadcast %13 : vector<1x4x1xf32> to vector<1x4x256xf32>
    %19 = arith.addf %17, %18 : vector<1x4x256xf32>
    %c0_9 = arith.constant 0 : index
    %c0_10 = arith.constant 0 : index
    %c0_11 = arith.constant 0 : index
    %20 = vector.load %arg4[%c0_9, %c0_10, %c0_11] : memref<1x4x256xf32, #tpu.memory_space<vmem>>, vector<1x4x256xf32>
    tpu.vector_store %arg4[%c0_9, %c0_10, %c0_11], %19 {strides = array<i32>} : memref<1x4x256xf32, #tpu.memory_space<vmem>>, vector<1x4x256xf32>,
    return
  }
  func.func @transform_0(%arg0: i32, %arg1: i32) -> (i32, i32, i32) {
    %c0_i32 = arith.constant 0 : i32
    %c0_i32_0 = arith.constant 0 : i32
    return %arg0, %arg1, %c0_i32 : i32, i32, i32
  }
  func.func @transform_1(%arg0: i32, %arg1: i32) -> (i32, i32) {
    %c0_i32 = arith.constant 0 : i32
    %c0_i32_0 = arith.constant 0 : i32
    %c0_i32_1 = arith.constant 0 : i32
    return %c0_i32, %c0_i32_0 : i32, i32
  }
  func.func @transform_2(%arg0: i32, %arg1: i32) -> (i32, i32, i32) {
    %c0_i32 = arith.constant 0 : i32
    %c0_i32_0 = arith.constant 0 : i32
    return %arg0, %arg1, %c0_i32 : i32, i32, i32
  }
}

</mosaic_0001>

<bundles_post_ra>
// kernel: tpu_custom_call.1
= control target key start
LH: loop header
LB: loop body
LE: loop exit
PB: predicated region body
PF: predicated region fallthrough
CT: control target
= control target key end

     0   :  { %7 = vsyncpa [#allocation3], 0  ;;  %s680_s0 = inlined_call_operand.hbm [shape: f32[2,4,256], index: 0, kind: input, shape index: {}]   ;;  %s681_s1 = inlined_call_operand.vmem [shape: f32[4,2], index: 1, kind: input, shape index: {}]   ;;  %s682_s2 = inlined_call_operand.hbm [shape: f32[2,4,256], index: 2, kind: output, shape index: {}]  }
   0x1   :  { %9 = vsyncpa [#allocation3 + $0x1], 0 }
   0x2   :  { %10 = vsyncpa [#allocation4], 0 }
   0x3   :  { %12 = vsyncpa [#allocation4 + $0x1], 0  ;;  %s539_s9 = smov 0   ;;  %s541_s10 = smov 0  }
   0x4   :  { %s543_s11 = smov 0   ;;  %s545_s12 = smov 0  }
   0x5   :  { %s547_s13 = smov 0   ;;  %s549_s14 = smov 0  }
   0x6 LB: > { %s322_s15 = sadd.s32 4294967295, %s517_s14   ;;  %s323_s16 = sadd.s32 4294967294, %s517_s14   ;;  %s517_s14 = sphi %s549_s14, %s18_s14   ;;  %s513_s13 = sphi %s547_s13, %s694_s13   ;;  %s509_s12 = sphi %s545_s12, %s693_s12   ;;  %s505_s11 = sphi %s543_s11, %s692_s11   ;;  %s501_s10 = sphi %s541_s10, %s691_s10   ;;  %s497_s9 = sphi %s539_s9, %s690_s9  }
   0x7   : > { %s30_s17 = sadd.s32 1, %s513_s13  ;;  %s39_s18 = sadd.s32 1, %s505_s11 }
   0x8   : > { %p32_p0 = scmp.ge.s32.totalorder %s30_s17, 2  ;;  %p46_p1 = scmp.ne.s32.totalorder %s505_s11, %s501_s10 }
   0x9   : > { %p47_p2 = scmp.eq.s32.totalorder %s517_s14, 0  ;;  %p52_p3 = scmp.ne.s32.totalorder %s501_s10, %s497_s9 }
   0xa   : > { %s696_s17 = smov (%p32_p0, %s30_s17), 0  ;;  %p53_p5 = scmp.eq.s32.totalorder %s322_s15, 0 }
   0xb   : > { %p580_p4 = por %p47_p2, %p46_p1  ;;  %s34_s20 = ssub.s32 %s513_s13, %s696_s17 }
   0xc   : > { %p99_p6 = scmp.eq.s32.totalorder %s322_s15, 1  ;;  %p37_p7 = scmp.eq.s32.totalorder %s34_s20, 0 }
   0xd   : > { %p586_p8 = por %p53_p5, %p52_p3  ;;  %p105_p10 = scmp.eq.s32.totalorder %s323_s16, 1 }
   0xe   : > { %p590_p9 = por %p99_p6, %p46_p1  ;;  %p351_p13 = scmp.lt.s32.totalorder %s517_s14, 2 }
   0xf   : > { %s595_s23 = scalar_select %p37_p7, %s505_s11, %s39_s18  }
  0x10   : > { %p597_p11 = por %p105_p10, %p52_p3  ;;  %s128_s25 = sand.u32 1, %s505_s11  }
  0x11   : > { %s326_s26 = sshll.u32 %s128_s25, 3  ;;  %s337_s27 = sshll.u32 %s513_s13, 7 }
  0x12   : > { %s686_s24 = scalar_select %p597_p11, 1, 0 }
  0x13   : > { %s140_s30 = scalar_lea.hbm %s680_s0, %s337_s27  ;;  %s132_s3 = scalar_lea.vmem [#allocation2], %s326_s26 }
  0x14   : > { %s142_s4 = sshll.u32 %s132_s3, 4  ;;  %p610_p0 = pnand %p351_p13, %p580_p4  ;;  %s143_s4 = int_to_ptr.vmem [resolvable:$true] %s142_s4 }
  0x15   : > { %p329_p1 = scmp.ge.s32.totalorder %s517_s14, 1  ;;  %p147_p2 = scmp.lt.s32.totalorder %s517_s14, 3 }
  0x16   : > { %s129_s6 = scalar_lea.sflag [#allocation3], %s128_s25  ;;  %p411_p3 = pneg %p610_p0 }
  0x17   : > { %s422_s7 = scalar_lea.vmem %s143_s4, 128  ;;  %s519_s8 = smov [#allocation2]  }
  0x18   : > { %p423_p5 = scmp.ne.s32.totalorder %s143_s4, %s422_s7  ;;  %s427_s15 = sshll.u32 %s519_s8, 4  ;;  %s428_s15 = int_to_ptr.vmem [resolvable:$false] %s427_s15 }
  0x19   : > { %s429_s16 = scalar_lea.vmem %s428_s15, 256  ;;  %p430_p10 = scmp.lt.s32.totalorder %s143_s4, %s428_s15 }
  0x1a   : > { %p425_p6 = pnand %p423_p5, %p411_p3  ;;  %p431_p12 = scmp.lt.s32.totalorder %s429_s16, %s422_s7 }
  0x1c   : > { %p426_p7 = pneg %p425_p6  ;;  %p432_p4 = por %p431_p12, %p430_p10 }
  0x1e   : > { %p433_p13 = pnand %p432_p4, %p426_p7 }
  0x20   : > { %436 = shalt.err (!%p433_p13)
}
  0x21   : > { %346 = dma.hbm_to_vmem [thread:$0]  (!%p610_p0), %s140_s30, 128, %s143_s4, %s129_s6  }
  0x22   : > { %p148_p11 = pnand %p329_p1, %p147_p2 }
  0x23   : > { %s625_s18 = sand.u32 (!%p148_p11), 1, %s501_s10  }
  0x24   : > { %151 = sbr.rel (%p148_p11) target bundleno = 351 (0x15f), region = 28  ;;  %s330_s19 = sshll.u32 (!%p148_p11), %s625_s18, 3 }
  0x25   : > { %s154_s20 = scalar_lea.sflag (!%p148_p11), [#allocation3], %s625_s18  ;;  %s157_s25 = scalar_lea.vmem (!%p148_p11), [#allocation2], %s330_s19 }
  0x29   : > { %488 = dma.done.wait (%p586_p8), %s154_s20, 128  }
  0x2a   : > { %490 = vsyncadd (%p586_p8), %s154_s20, 4294967168  ;;  %v178_v0 = vld [vmem:[%s157_s25] sm:$0xff]  ;;  %vm183_vm0 = vcmask 1043456   ;;  %v520_v6 = vmov 0   ;;  %v521_v8 = vmov 1   ;;  %v201_v16 = vlaneseq  ;;  %s338_s21 = sshll.u32 %s509_s12, 7 }
  0x2b   : > { %v179_v1 = vmul.f32 %v178_v0, %v178_v0  ;;  %404 = vset.pattern.permute.xlu0 %v520_v6  ;;  %v192_v7 = vld [vmem:[%s681_s1] sm:$0xf]  ;;  %405 = vset.pattern.permute.xlu1 %v521_v8  ;;  %v522_v14 = vmov 839922192   ;;  %s177_s28 = scalar_lea.vmem [#allocation5], %s330_s19  ;;  %s236_s4 = scalar_lea.hbm %s682_s2, %s338_s21 }
  0x2c   : > { %209 = vperm.xlu1 %405, %v192_v7   ;;  %v199_v15 = vunpack.c.l.s4 %v522_v14  ;;  %v202_v18 = vshrl.u32 %v201_v16, 7  ;;  %s238_s29 = sshll.u32 %s177_s28, 4  ;;  %s222_s5 = scalar_lea.sflag [#allocation4], %s625_s18  ;;  %s239_s29 = int_to_ptr.vmem [resolvable:$true] %s238_s29 }
  0x2d   : > { %v181_v2 = vcombine.high %v179_v1, %v179_v1  ;;  %v184_v3 = vsel %vm183_vm0, %v179_v1, 0.0  ;;  %s437_s6 = scalar_lea.vmem %s239_s29, 128  ;;  %s523_s7 = smov [#allocation5]  }
  0x2e   : > { %v200_v17 = vunpack.c.0.s8 %v199_v15  ;;  %p438_p8 = scmp.ne.s32.totalorder %s239_s29, %s437_s6  ;;  %s441_s8 = sshll.u32 %s523_s7, 4  ;;  %s442_s8 = int_to_ptr.vmem [resolvable:$false] %s441_s8 }
  0x2f   : > { %v185_v4 = vsel %vm183_vm0, %v181_v2, 0.0  ;;  %s443_s12 = scalar_lea.vmem %s442_s8, 256  ;;  %p444_p0 = scmp.lt.s32.totalorder %s239_s29, %s442_s8 }
  0x30   : > { %v186_v5 = vadd.f32 %v185_v4, %v184_v3  ;;  %v203_v19 = vsub.s32 %v200_v17, %v202_v18  ;;  %p439_p11 = pnand %p438_p8, %p590_p9  ;;  %p445_p1 = scmp.lt.s32.totalorder %s443_s12, %s437_s6 }
  0x32   : > { %187 = vadd.xlane.f32.xlu0 %v186_v5  ;;  %p440_p12 = pneg %p439_p11  ;;  %p446_p2 = por %p445_p1, %p444_p0 }
  0x34   : > { %p447_p3 = pnand %p446_p2, %p440_p12 }
  0xa7   : > { %v210_v20 = vpop.permute.xlu1 %209 }
  0xa8   : > { %v217_v23 = vrot.slane %v210_v20, %v203_v19 }
  0xbb   : > { %v188_v9 = vpop.xlane.xlu0 %187 }
  0xbc   : > { %v189_v10 = vmul.f32 0.00390625, %v188_v9 }
  0xbe   : > { %v190_v11 = vadd.f32 1e-06, %v189_v10 }
  0xc0   : > { %407 = vrsqrt.f32 %v190_v11 }
  0xcd   : > { %v408_v12 = vpop.eup %407 }
  0xce   : > { %v193_v13 = vmul.f32 %v408_v12, %v192_v7 }
  0xd0   : > { %196 = vperm.xlu0 %404, %v193_v13  }
  0xd4   : > { %406 = vset.pattern.permute.xlu0 %v521_v8 }
 0x14b   : > { %v197_v21 = vpop.permute.xlu0 %196 }
 0x14c   : > { %v204_v22 = vrot.slane %v197_v21, %v203_v19 }
 0x14e   : > { %v206_v24 = vmul.f32 %v204_v22, %v178_v0 }
 0x150   : > { %v219_v25 = vadd.f32 %v217_v23, %v206_v24 }
 0x152   : > { %220 = vst [vmem:[%s177_s28] sm:$0xff] %v219_v25 }
 0x153   : > { %450 = shalt.err (!%p447_p3)
}
 0x154   : > { %s451_s15 = scalar_lea.hbm %s236_s4, 128  ;;  %s455_s19 = scalar_lea.hbm %s682_s2, 256 }
 0x155   : > { %p452_p5 = scmp.ne.s32.totalorder %s236_s4, %s451_s15  ;;  %p456_p10 = scmp.lt.s32.totalorder %s236_s4, %s682_s2 }
 0x156   : > { %p457_p4 = scmp.lt.s32.totalorder %s455_s19, %s451_s15 }
 0x157   : > { %p453_p6 = pnand %p452_p5, %p590_p9 }
 0x158   : > { %p458_p13 = por %p457_p4, %p456_p10 }
 0x159   : > { %p454_p7 = pneg %p453_p6 }
 0x15b   : > { %p459_p8 = pnand %p458_p13, %p454_p7 }
 0x15d   : > { %462 = shalt.err (!%p459_p8)
}
 0x15e   : > { %341 = dma.vmem_to_hbm [thread:$0]  (%p590_p9), %s239_s29, 128, %s236_s4, %s222_s5  }
 0x15f PF: > { %s250_s26 = sand.u32 1, %s497_s9   ;;  %p688_p11 = scmp.ne.s32.totalorder %s686_s24, 0 }
 0x160   : > { %p689_p12 = scmp.ge.s32.totalorder %s517_s14, 2  ;;  %s251_s27 = scalar_lea.sflag [#allocation4], %s250_s26 }
 0x162   : > { %p348_p0 = pnand %p689_p12, %p688_p11 }
 0x164   : > { %p349_p1 = pneg %p348_p0 }
 0x166   : > { %492 = dma.done.wait (%p349_p1), %s251_s27, 128  }
 0x167   : > { %494 = vsyncadd (%p349_p1), %s251_s27, 4294967168  ;;  %s18_s14 = sadd.s32 1, %s517_s14   ;;  %s690_s9 = smov %s501_s10 }
 0x168   : > { %p15_p2 = scmp.ge.s32.totalorder %s18_s14, 4   ;;  %s691_s10 = smov %s505_s11 }
 0x169   : > { %s692_s11 = smov %s595_s23  ;;  %s693_s12 = smov %s513_s13 }
 0x16a   : > { %s694_s13 = smov %s696_s17  ;;  %17 = sbr.rel (!%p15_p2) target bundleno = 6 (0x6), region = 73 }
 0x16f   :  { %256 = vsyncpa [#allocation3], 1 }
 0x170   :  { %258 = vsyncpa [#allocation3 + $0x1], 1 }
 0x171   :  { %259 = vsyncpa [#allocation4], 1 }
 0x172   :  { %261 = vsyncpa [#allocation4 + $0x1], 1 }

</bundles_post_ra>
